<compile_context>
chip_gen: v6e
topology: v6e:2x2x1
jax: 0.10.0
libtpu: 0.0.40
codegen_flags: <defaults>
</compile_context>

<pallas_src>
import jax
import jax.numpy as jnp
from jax import lax
from jax.experimental import pallas as pl
from jax.experimental.pallas import tpu as pltpu


def _encoder_kernel(xw_ref, w_ref, o_ref):
    # xw_ref : (H, Tt+1) chunk-transposed window; column i = half-kernel chunk
    #          (tile_start + i) of the input signal.
    # w_ref  : (N, K)    filter bank (taps along K).
    # o_ref  : (N, Tt)   conv(stride=K//2) + relu output for this (batch, T-tile).
    tt = o_ref.shape[1]
    xw = xw_ref[...]
    xa = xw[:, :tt]                                  # taps 0..H-1  of each frame
    xb = xw[:, 1:tt + 1]                             # taps H..K-1  of each frame
    frames_t = jnp.concatenate([xa, xb], axis=0)     # (K, Tt) frame matrix
    y = lax.dot_general(                             # (N, K) @ (K, Tt) -> (N, Tt)
        w_ref[...], frames_t,
        dimension_numbers=(((1,), (0,)), ((), ())),
        preferred_element_type=jnp.float32)
    o_ref[...] = jnp.maximum(y, 0.0).astype(o_ref.dtype)


def encoder_forward(x, weight, *, tile_t=None, input_dtype=None,
                    vmem_out_budget=8 * 1024 * 1024):
    """x: [B, L], weight: [N, 1, K]  ->  relu(conv1d(stride=K//2)) : [B, N, T_out]."""
    B, L = x.shape
    N, in_ch, K = weight.shape
    if in_ch != 1:
        # TODO(synk): in_channels > 1 (contraction dim becomes C*K) not implemented.
        raise NotImplementedError("only in_channels=1 is supported")
    if K % 2 != 0:
        # TODO(synk): odd kernel_size with stride=K//2 needs a different framing.
        raise NotImplementedError("kernel_size must be even")
    if L < K:
        raise ValueError(f"input length {L} shorter than kernel_size {K}")

    H = K // 2                       # stride
    T_out = (L - K) // H + 1         # PyTorch Conv1d output length

    # --- choose the T_out tile ---------------------------------------------
    if tile_t is None:
        # Prefer one full-T tile per batch element: no pad, no post-kernel slice
        # pass over the dominant output array, minimal grid overhead.
        max_single = max(1, vmem_out_budget // (4 * N))
        if T_out <= max_single:
            tile_t = T_out
        else:
            tile_t = max(128, min(4096, (max_single // 128) * 128))
    if T_out <= tile_t:
        Tt, num_tiles = T_out, 1     # single tile == full dim (always legal)
    else:
        Tt = tile_t                  # keep a multiple of 128 -> lane-dense stores
        num_tiles = -(-T_out // Tt)  # cdiv
    T_pad = num_tiles * Tt

    # --- frame the signal once (no duplicated overlapping streams) ----------
    L_used = (T_out + 1) * H
    L_need = (T_pad + 1) * H
    x_u = x[:, :L_used]
    if L_need > L_used:
        x_u = jnp.pad(x_u, ((0, 0), (0, L_need - L_used)))
    xc = x_u.reshape(B, T_pad + 1, H)                       # half-kernel chunks
    main = xc[:, :T_pad, :].reshape(B, num_tiles, Tt, H)
    bnd = xc[:, Tt::Tt, :][:, :, None, :]                   # (B, num_tiles, 1, H)
    xwin = jnp.concatenate([main, bnd], axis=2)             # (B, num_tiles, Tt+1, H)
    xct = jnp.transpose(xwin, (0, 1, 3, 2))                 # (B, num_tiles, H, Tt+1)

    w2 = weight[:, 0, :]                                    # (N, K)

    if input_dtype is not None:                             # e.g. jnp.bfloat16 on v6e/v7x
        xct = xct.astype(input_dtype)
        w2 = w2.astype(input_dtype)

    in_bytes = xct.size * xct.dtype.itemsize + w2.size * w2.dtype.itemsize
    out_bytes = B * N * T_pad * jnp.dtype(x.dtype).itemsize
    cost = pl.CostEstimate(flops=2 * B * N * T_pad * K,
                           transcendentals=0,
                           bytes_accessed=int(in_bytes + out_bytes))

    out = pl.pallas_call(
        _encoder_kernel,
        out_shape=jax.ShapeDtypeStruct((B, N, T_pad), x.dtype),
        grid=(B, num_tiles),
        in_specs=[
            pl.BlockSpec((None, None, H, Tt + 1), lambda b, j: (b, j, 0, 0)),
            pl.BlockSpec((N, K), lambda b, j: (0, 0)),
        ],
        out_specs=pl.BlockSpec((None, N, Tt), lambda b, j: (b, 0, j)),
        compiler_params=pltpu.CompilerParams(
            dimension_semantics=("parallel", "parallel"),
            vmem_limit_bytes=32 * 1024 * 1024),
        cost_estimate=cost,
    )(xct, w2)                                              # (B, N, T_pad)

    if T_pad != T_out:
        out = out[:, :, :T_out]
    return out


def _reference_forward(x, weight):
    """Pure-JAX reference: Conv1d(stride=K//2, no bias) + ReLU, NCT output."""
    K = weight.shape[-1]
    y = lax.conv_general_dilated(
        x[:, None, :], weight,
        window_strides=(K // 2,), padding="VALID",
        dimension_numbers=("NCH", "OIH", "NCH"))
    return jnp.maximum(y, 0.0)


if __name__ == "__main__":
    key = jax.random.PRNGKey(0)
    kx, kw, kx2, kx3, kw3 = jax.random.split(key, 5)

    B, L = 2, 128
    kernel_size, out_channels, in_channels = 16, 64, 1

    x = jax.random.normal(kx, (B, L), dtype=jnp.float32)
    weight = 0.1 * jax.random.normal(
        kw, (out_channels, in_channels, kernel_size), dtype=jnp.float32)

    # 1) auto path (single full-T tile, no pad / no post-slice)
    y = jax.block_until_ready(encoder_forward(x, weight))
    y_ref = _reference_forward(x, weight)
    assert y.shape == y_ref.shape, (y.shape, y_ref.shape)
    assert jnp.allclose(y, y_ref, atol=1e-5, rtol=1e-5), "mismatch (single tile)"

    # 2) forced multi-tile path (T_out tiling, boundary chunks, tail pad/slice)
    L2 = 1608                                   # T_out = 200 -> two 128-wide tiles
    x2 = jax.random.normal(kx2, (B, L2), dtype=jnp.float32)
    y2 = jax.block_until_ready(encoder_forward(x2, weight, tile_t=128))
    y2_ref = _reference_forward(x2, weight)
    assert y2.shape == y2_ref.shape, (y2.shape, y2_ref.shape)
    assert jnp.allclose(y2, y2_ref, atol=1e-5, rtol=1e-5), "mismatch (tiled)"

    # 3) module defaults (out_channels=256), longer signal, auto single tile
    L3 = 4112                                   # T_out = 513 (masked tail stores)
    x3 = jax.random.normal(kx3, (B, L3), dtype=jnp.float32)
    w3 = 0.1 * jax.random.normal(kw3, (256, 1, 16), dtype=jnp.float32)
    y3 = jax.block_until_ready(encoder_forward(x3, w3))
    y3_ref = _reference_forward(x3, w3)
    assert y3.shape == y3_ref.shape, (y3.shape, y3_ref.shape)
    assert jnp.allclose(y3, y3_ref, atol=1e-5, rtol=1e-5), "mismatch (defaults)"

    print("KERNEL_OK")
</pallas_src>

<mosaic_0001>
module attributes {stable_mosaic.version = 11 : i64} {
  func.func @_encoder_kernel(%arg0: i32, %arg1: i32, %arg2: memref<1x1x8x16xf32, #tpu.memory_space<vmem>>, %arg3: memref<64x16xf32, #tpu.memory_space<vmem>>, %arg4: memref<1x64x15xf32, #tpu.memory_space<vmem>>) attributes {dimension_semantics = [#tpu.dimension_semantics<parallel>, #tpu.dimension_semantics<parallel>], iteration_bounds = array<i64: 2, 1>, scalar_prefetch = 0 : i64, scratch_operands = 0 : i64, tpu.core_type = #tpu.core_type<tc>, window_params = [{transform_indices = @transform_0, window_bounds = array<i64: 1, 1, 8, 16>}, {pipeline_mode = #tpu.pipeline_mode<synchronous>, transform_indices = @transform_1, window_bounds = array<i64: 64, 16>}, {transform_indices = @transform_2, window_bounds = array<i64: 1, 64, 15>}]} {
    %c0 = arith.constant 0 : index
    %c0_0 = arith.constant 0 : index
    %c0_1 = arith.constant 0 : index
    %c0_2 = arith.constant 0 : index
    %0 = vector.load %arg2[%c0, %c0_0, %c0_1, %c0_2] : memref<1x1x8x16xf32, #tpu.memory_space<vmem>>, vector<1x1x8x16xf32>
    %1 = vector.shape_cast %0 : vector<1x1x8x16xf32> to vector<8x16xf32>
    %2 = vector.extract_strided_slice %1 {offsets = [0, 0], sizes = [8, 15], strides = [1, 1]} : vector<8x16xf32> to vector<8x15xf32>
    %3 = vector.extract_strided_slice %1 {offsets = [0, 1], sizes = [8, 15], strides = [1, 1]} : vector<8x16xf32> to vector<8x15xf32>
    %4 = tpu.concatenate %2, %3 in 0 : vector<8x15xf32>, vector<8x15xf32> -> vector<16x15xf32>
    %c0_3 = arith.constant 0 : index
    %c0_4 = arith.constant 0 : index
    %5 = vector.load %arg3[%c0_3, %c0_4] : memref<64x16xf32, #tpu.memory_space<vmem>>, vector<64x16xf32>
    %cst = arith.constant dense<0.000000e+00> : vector<64x15xf32>
    %6 = tpu.matmul %5, %4, %cst {dimension_numbers = #tpu.dot_dimension_numbers<[1], [0], [0], [1], [0, 0, 1, 1], [], []>} : vector<64x16xf32>, vector<16x15xf32>, vector<64x15xf32> -> vector<64x15xf32>
    %cst_5 = arith.constant 0.000000e+00 : f32
    %7 = vector.broadcast %cst_5 : f32 to vector<64x15xf32>
    %8 = arith.maximumf %6, %7 : vector<64x15xf32>
    %c0_6 = arith.constant 0 : index
    %c0_7 = arith.constant 0 : index
    %c0_8 = arith.constant 0 : index
    %9 = vector.load %arg4[%c0_6, %c0_7, %c0_8] : memref<1x64x15xf32, #tpu.memory_space<vmem>>, vector<1x64x15xf32>
    %10 = vector.shape_cast %9 : vector<1x64x15xf32> to vector<64x15xf32>
    %11 = vector.shape_cast %8 : vector<64x15xf32> to vector<1x64x15xf32>
    tpu.vector_store %arg4[%c0_6, %c0_7, %c0_8], %11 {strides = array<i32>} : memref<1x64x15xf32, #tpu.memory_space<vmem>>, vector<1x64x15xf32>,
    return
  }
  func.func @transform_0(%arg0: i32, %arg1: i32) -> (i32, i32, i32, i32) {
    %c0_i32 = arith.constant 0 : i32
    %c0_i32_0 = arith.constant 0 : i32
    %c0_i32_1 = arith.constant 0 : i32
    return %arg0, %arg1, %c0_i32, %c0_i32_0 : i32, i32, i32, i32
  }
  func.func @transform_1(%arg0: i32, %arg1: i32) -> (i32, i32) {
    %c0_i32 = arith.constant 0 : i32
    %c0_i32_0 = arith.constant 0 : i32
    %c0_i32_1 = arith.constant 0 : i32
    return %c0_i32, %c0_i32_0 : i32, i32
  }
  func.func @transform_2(%arg0: i32, %arg1: i32) -> (i32, i32, i32) {
    %c0_i32 = arith.constant 0 : i32
    %c0_i32_0 = arith.constant 0 : i32
    return %arg0, %c0_i32, %arg1 : i32, i32, i32
  }
}

</mosaic_0001>

<bundles_post_ra>
// kernel: tpu_custom_call.1
= control target key start
LH: loop header
LB: loop body
LE: loop exit
PB: predicated region body
PF: predicated region fallthrough
CT: control target
= control target key end

     0   :  { %s526_s9 = smov 0   ;;  %s528_s10 = smov 0   ;;  %s603_s0 = inlined_call_operand.vmem [shape: f32[2,1,8,16], index: 0, kind: input, shape index: {}]   ;;  %s604_s1 = inlined_call_operand.vmem [shape: f32[64,16], index: 1, kind: input, shape index: {}]   ;;  %s605_s2 = inlined_call_operand.vmem [shape: f32[2,64,15], index: 2, kind: output, shape index: {}]  }
   0x1   :  { %s530_s11 = smov 0  }
   0x2 LB: > { %s24_s12 = sadd.s32 1, %s504_s10  ;;  %p416_p0 = scmp.ge.s32.totalorder %s508_s11, 1  ;;  %s508_s11 = sphi %s530_s11, %s12_s11   ;;  %s504_s10 = sphi %s528_s10, %s607_s10   ;;  %s500_s9 = sphi %s526_s9, %s606_s9  }
   0x3   : > { %p26_p1 = scmp.ge.s32.totalorder %s24_s12, 2  ;;  %p130_p2 = scmp.lt.s32.totalorder %s508_s11, 3 }
   0x5   : > { %s609_s12 = smov (%p26_p1, %s24_s12), 0  ;;  %p131_p3 = pnand %p416_p0, %p130_p2 }
   0x6   : > { %p157_p4 = scmp.lt.s32.totalorder (!%p131_p3), %s500_s9, 1  ;;  %s510_s21 = smov (!%p131_p3), 127  }
   0x7   : > { %134 = sbr.rel (%p131_p3) target bundleno = 337 (0x151), region = 28 }
   0xc   : > { %v177_v0 = vld [vmem:[%s604_s1] sm:$0xff]  ;;  %vm185_vm0 = vcmask 130048   ;;  %s611_s9 = smov (!%p157_p4, %s500_s9), 1  ;;  %v178_v4 = vld [vmem:[%s604_s1 + $0x8] sm:$0xff]  ;;  %v179_v6 = vld [vmem:[%s604_s1 + $0x10] sm:$0xff]  ;;  %vm323_vm1 = vcmask 121856  }
   0xd   : > { %v181_v1 = vld [vmem:[%s604_s1 + $0x20] sm:$0xff]  ;;  %445 = vmatprep.mubr.msk.f32.mxu0 %vm185_vm0, %v177_v0  ;;  %s417_s17 = sshll.u32 %s611_s9, 3  ;;  %v182_v5 = vld [vmem:[%s604_s1 + $0x28] sm:$0xff]  ;;  %v183_v7 = vld [vmem:[%s604_s1 + $0x30] sm:$0xff]  ;;  %s430_s6 = sshll.u32 %s611_s9, 6 }
   0xe   : > { %451 = vmatprep.mubr.msk.f32.mxu1 %vm185_vm0, %v181_v1  ;;  %s163_s20 = scalar_lea.vmem %s603_s0, %s417_s17  ;;  %v180_v8 = vld [vmem:[%s604_s1 + $0x18] sm:$0xff]  ;;  %s171_s13 = scalar_lea.vmem %s605_s2, %s430_s6 }
   0xf   : > { %v172_v2 = vld [vmem:[%s163_s20] sm:$0xff]  ;;  %v184_v9 = vld [vmem:[%s604_s1 + $0x38] sm:$0xff] }
  0x10   : > { %174 = vrot.lane.b32.xlu0 %v172_v2, %s510_s21 }
  0x82   : > { %v175_v3 = vpop.permute.xlu0 %174 }
  0x83   : > { %441 = vmatprep.subr.mxu0 %v175_v3  ;;  %457 = vmatprep.subr.mxu1 %v175_v3 }
  0x84   : > { %442 = vmatpush3.msra.mxu0 %v175_v3  ;;  %459 = vmatpush3.msra.mxu1 %v175_v3 }
  0x85   : > { %443 = vmatprep.subr.mxu0 %v172_v2  ;;  %458 = vmatprep.subr.mxu1 %v172_v2 }
  0x86   : > { %444 = vmatpush3.msra.mxu0 %v172_v2  ;;  %460 = vmatpush3.msra.mxu1 %v172_v2 }
  0x87   : > { %446 = vmatmul.mubr.msk.f32.vlgmr.msra.gmra.mxu0 %vm185_vm0, %v178_v4  ;;  %452 = vmatmul.mubr.msk.f32.vlgmr.msra.gmra.mxu1 %vm185_vm0, %v182_v5 }
  0x88   : > { %448 = vmatprep.mubr.msk.f32.mxu0 %vm185_vm0, %v179_v6  ;;  %454 = vmatprep.mubr.msk.f32.mxu1 %vm185_vm0, %v183_v7 }
  0x8b   : > { %449 = vmatmul.mubr.msk.f32.gmra.mxu0 %vm185_vm0, %v180_v8  ;;  %455 = vmatmul.mubr.msk.f32.gmra.mxu1 %vm185_vm0, %v184_v9 }
 0x147   : > { %v447_v10 = vpop.f32.mrf.mxu0  ;;  %v453_v11 = vpop.f32.mrf.mxu1 }
 0x148   : > { %v316_v12 = vmax.f32 %v447_v10, 0.0  ;;  %v320_v13 = vmax.f32 %v453_v11, 0.0 }
 0x149   : > { %v276_v14 = vpop.f32.mrf.mxu0  ;;  %v296_v15 = vpop.f32.mrf.mxu1 }
 0x14a   : > { %325 = vst.msk [vmem:[%s171_s13 + $0x8] sm:$0xff] %vm323_vm1, %v316_v12  ;;  %329 = vst.msk [vmem:[%s171_s13 + $0x28] sm:$0xff] %vm323_vm1, %v320_v13  ;;  %v315_v16 = vmax.f32 %v276_v14, 0.0  ;;  %v319_v17 = vmax.f32 %v296_v15, 0.0 }
 0x14b   : > { %v450_v18 = vpop.f32.mrf.mxu0  ;;  %v456_v19 = vpop.f32.mrf.mxu1 }
 0x14c   : > { %324 = vst.msk [vmem:[%s171_s13] sm:$0xff] %vm323_vm1, %v315_v16  ;;  %328 = vst.msk [vmem:[%s171_s13 + $0x20] sm:$0xff] %vm323_vm1, %v319_v17  ;;  %v318_v20 = vmax.f32 %v450_v18, 0.0  ;;  %v322_v21 = vmax.f32 %v456_v19, 0.0 }
 0x14d   : > { %v286_v22 = vpop.f32.mrf.mxu0  ;;  %v306_v23 = vpop.f32.mrf.mxu1 }
 0x14e   : > { %327 = vst.msk [vmem:[%s171_s13 + $0x18] sm:$0xff] %vm323_vm1, %v318_v20  ;;  %331 = vst.msk [vmem:[%s171_s13 + $0x38] sm:$0xff] %vm323_vm1, %v322_v21  ;;  %v317_v24 = vmax.f32 %v286_v22, 0.0  ;;  %v321_v25 = vmax.f32 %v306_v23, 0.0 }
 0x150   : > { %326 = vst.msk [vmem:[%s171_s13 + $0x10] sm:$0xff] %vm323_vm1, %v317_v24  ;;  %330 = vst.msk [vmem:[%s171_s13 + $0x30] sm:$0xff] %vm323_vm1, %v321_v25 }
 0x151 PF: > { %s12_s11 = sadd.s32 1, %s508_s11   ;;  %s606_s9 = smov %s504_s10 }
 0x152   : > { %p9_p5 = scmp.ge.s32.totalorder %s12_s11, 4   ;;  %s607_s10 = smov %s609_s12 }
 0x154   :  { %11 = sbr.rel (!%p9_p5) target bundleno = 2 (0x2), region = 58 }

</bundles_post_ra>
